<compile_context>
chip_gen: v7x
topology: tpu7x:2x2x1
jax: 0.10.0
libtpu: 0.0.40
codegen_flags: <defaults>
</compile_context>

<pallas_src>
import jax
import jax.numpy as jnp
from jax import lax
from jax.experimental import pallas as pl
from jax.experimental.pallas import tpu as pltpu


def _pick_tile(n, target=256):
    """Largest divisor of n that is <= target (prefer multiples of 128, then 8)."""
    if n <= target:
        return n
    best = None
    for t in range(target, 0, -1):
        if n % t == 0:
            if t % 128 == 0:
                return t
            if best is None and t % 8 == 0:
                best = t
    return best if best is not None else n


def cross_modal_attention_kernel(rgb_ref, dep_ref,       # activations
                                 qk_ref, kb_w_ref,       # folded QK matrix, key-side bias vec
                                 wv_ref, bv_ref,          # value projection
                                 gamma_ref,               # scalar in SMEM
                                 out_ref,
                                 qm_scr, m_scr, l_scr, acc_scr):
    ki = pl.program_id(2)
    nk = pl.num_programs(2)

    @pl.when(ki == 0)
    def _init():
        # Fold the query projection once per (batch, q-tile): qm = rgb @ (Wq^T Wk)
        qm = lax.dot_general(rgb_ref[0], qk_ref[...],
                             (((1,), (0,)), ((), ())),
                             preferred_element_type=jnp.float32)
        qm_scr[...] = qm.astype(qm_scr.dtype)
        m_scr[...] = jnp.full(m_scr.shape, -jnp.inf, dtype=m_scr.dtype)
        l_scr[...] = jnp.zeros(l_scr.shape, dtype=l_scr.dtype)
        acc_scr[...] = jnp.zeros(acc_scr.shape, dtype=acc_scr.dtype)

    dep = dep_ref[0]                                         # (TK, C)

    # Score tile (TQ, TK): contract C on axis 1 of both operands (no explicit .T).
    s = lax.dot_general(qm_scr[...], dep,
                        (((1,), (1,)), ((), ())),
                        preferred_element_type=jnp.float32)
    # Key-side rank-1 bias term: (1, TK) = (Wk^T bq) . dep_j, varies over keys.
    kb = lax.dot_general(kb_w_ref[...], dep,
                         (((1,), (1,)), ((), ())),
                         preferred_element_type=jnp.float32)
    s = s + kb

    # Online softmax update.
    m_prev = m_scr[...]
    m_new = jnp.maximum(m_prev, jnp.max(s, axis=-1, keepdims=True))
    alpha = jnp.exp(m_prev - m_new)
    p = jnp.exp(s - m_new)

    # Value projection for this key tile (native dtype into the MXU).
    v = lax.dot_general(dep, wv_ref[...],
                        (((1,), (0,)), ((), ())),
                        preferred_element_type=jnp.float32) + bv_ref[...]
    v = v.astype(dep.dtype)

    l_scr[...] = alpha * l_scr[...] + jnp.sum(p, axis=-1, keepdims=True)
    acc_scr[...] = alpha * acc_scr[...] + lax.dot_general(
        p.astype(v.dtype), v, (((1,), (0,)), ((), ())),
        preferred_element_type=jnp.float32)
    m_scr[...] = m_new

    @pl.when(ki == nk - 1)
    def _finalize():
        gamma = gamma_ref[0]
        # Normalization deferred to a single per-tile divide (cheap; keep exact).
        inv_l = pl.reciprocal(l_scr[...], approx=False)
        out = gamma * (acc_scr[...] * inv_l) + rgb_ref[0].astype(jnp.float32)
        out_ref[0] = out.astype(out_ref.dtype)


def cross_modal_attention(rgb_nchw, depth_nchw, params, *, q_tile=None, k_tile=None):
    """params: wq (C//8, C), bq (C//8,), wk, bk, wv (C, C), bv (C,), gamma ()."""
    B, C, H, W = rgb_nchw.shape
    HW = H * W
    dtype = rgb_nchw.dtype

    # NCHW -> (B, HW, C) token layout.
    rgb_tok = jnp.transpose(rgb_nchw, (0, 2, 3, 1)).reshape(B, HW, C)
    dep_tok = jnp.transpose(depth_nchw, (0, 2, 3, 1)).reshape(B, HW, C)

    wq = params["wq"].astype(jnp.float32)        # (C8, C)
    wk = params["wk"].astype(jnp.float32)        # (C8, C)
    bq = params["bq"].astype(jnp.float32)        # (C8,)
    bk = params["bk"].astype(jnp.float32)        # (C8,)  (only enters softmax-invariant terms)
    del bk

    # Folded Q/K projection and key-side bias vector.
    qk_mat = (wq.T @ wk).astype(dtype)                       # (C, C)
    kb_w = (wk.T @ bq).reshape(1, C).astype(dtype)           # (1, C)
    wv_t = params["wv"].T.astype(dtype)                      # (C, C)
    bv = params["bv"].reshape(1, C).astype(jnp.float32)      # (1, C)
    gamma = jnp.asarray(params["gamma"], jnp.float32).reshape(1)

    TQ = q_tile or _pick_tile(HW)
    TK = k_tile or _pick_tile(HW)
    assert HW % TQ == 0 and HW % TK == 0

    # Explicit scoped-VMEM budget (tile-aware; stays well under v7x's 64 MiB).
    isz = jnp.dtype(dtype).itemsize
    per_step = (2 * TQ * C * isz        # rgb (double-buffered)
                + 2 * TK * C * isz      # dep (double-buffered)
                + 2 * TQ * C * isz      # out (double-buffered)
                + 2 * C * C * isz       # QK matrix + Wv^T
                + 2 * C * 4             # kb_w + bv
                + TQ * C * isz          # qm scratch
                + TQ * C * 4            # accumulator
                + 2 * TQ * 4            # running max / sum
                + 3 * TQ * TK * 4)      # score / prob temporaries
    vmem_limit = int(min(max(2 * per_step, 32 * 1024 * 1024), 48 * 1024 * 1024))

    out_tok = pl.pallas_call(
        cross_modal_attention_kernel,
        out_shape=jax.ShapeDtypeStruct((B, HW, C), dtype),
        grid=(B, HW // TQ, HW // TK),
        in_specs=[
            pl.BlockSpec((1, TQ, C), lambda b, qi, ki: (b, qi, 0)),    # rgb tokens
            pl.BlockSpec((1, TK, C), lambda b, qi, ki: (b, ki, 0)),    # depth tokens
            pl.BlockSpec((C, C), lambda b, qi, ki: (0, 0)),            # M = Wq^T Wk
            pl.BlockSpec((1, C), lambda b, qi, ki: (0, 0)),            # w = Wk^T bq
            pl.BlockSpec((C, C), lambda b, qi, ki: (0, 0)),            # Wv^T
            pl.BlockSpec((1, C), lambda b, qi, ki: (0, 0)),            # bv
            pl.BlockSpec(memory_space=pltpu.MemorySpace.SMEM),         # gamma scalar
        ],
        out_specs=pl.BlockSpec((1, TQ, C), lambda b, qi, ki: (b, qi, 0)),
        scratch_shapes=[
            pltpu.VMEM((TQ, C), dtype),         # qm = rgb @ M
            pltpu.VMEM((TQ, 1), jnp.float32),   # running max
            pltpu.VMEM((TQ, 1), jnp.float32),   # running sum
            pltpu.VMEM((TQ, C), jnp.float32),   # output accumulator
        ],
        compiler_params=pltpu.CompilerParams(
            dimension_semantics=("parallel", "parallel", "arbitrary"),
            vmem_limit_bytes=vmem_limit,
        ),
    )(rgb_tok, dep_tok, qk_mat, kb_w, wv_t, bv, gamma)

    # (B, HW, C) -> NCHW
    return out_tok.reshape(B, H, W, C).transpose(0, 3, 1, 2)


def reference_jax(rgb, depth, params):
    """Pure-JAX reference matching the PyTorch forward (NCHW)."""
    B, C, H, W = rgb.shape
    HW = H * W
    q = jnp.einsum("bchw,oc->bohw", rgb, params["wq"]) + params["bq"][None, :, None, None]
    k = jnp.einsum("bchw,oc->bohw", depth, params["wk"]) + params["bk"][None, :, None, None]
    v = jnp.einsum("bchw,oc->bohw", depth, params["wv"]) + params["bv"][None, :, None, None]
    q = q.reshape(B, -1, HW).transpose(0, 2, 1)          # (B, HW, C//8)
    k = k.reshape(B, -1, HW)                             # (B, C//8, HW)
    v = v.reshape(B, -1, HW)                             # (B, C, HW)
    attn = jax.nn.softmax(jnp.einsum("bnc,bcm->bnm", q, k), axis=-1)
    out = jnp.einsum("bcm,bnm->bcn", v, attn).reshape(B, C, H, W)
    return params["gamma"] * out + rgb


if __name__ == "__main__":
    B, C, H, W = 2, 32, 8, 8
    C8 = C // 8

    key = jax.random.PRNGKey(0)
    ks = jax.random.split(key, 8)
    params = {
        # Conv2d(C, C//8, 1): weight (C//8, C, 1, 1) squeezed.
        "wq": 0.1 * jax.random.normal(ks[0], (C8, C), jnp.float32),
        "bq": 0.1 * jax.random.normal(ks[1], (C8,), jnp.float32),
        "wk": 0.1 * jax.random.normal(ks[2], (C8, C), jnp.float32),
        "bk": 0.1 * jax.random.normal(ks[3], (C8,), jnp.float32),
        "wv": 0.1 * jax.random.normal(ks[4], (C, C), jnp.float32),
        "bv": 0.1 * jax.random.normal(ks[5], (C,), jnp.float32),
        # PyTorch inits gamma to zero; use a nonzero value so the attention
        # branch is exercised in this synthetic test.
        "gamma": jnp.float32(0.5),
    }

    rgb_feat = jax.random.normal(ks[6], (B, C, H, W), jnp.float32)
    depth_feat = jax.random.normal(ks[7], (B, C, H, W), jnp.float32)

    out = cross_modal_attention(rgb_feat, depth_feat, params)
    out = jax.block_until_ready(out)

    ref = reference_jax(rgb_feat, depth_feat, params)
    assert out.shape == (B, C, H, W)
    assert jnp.allclose(out, ref, atol=2e-4, rtol=2e-4), "mismatch vs. reference"

    print("KERNEL_OK")
</pallas_src>

<mosaic_0001>
module attributes {stable_mosaic.version = 11 : i64} {
  func.func @cross_modal_attention_kernel(%arg0: i32, %arg1: i32, %arg2: i32, %arg3: memref<1x64x32xf32, #tpu.memory_space<vmem>>, %arg4: memref<1x64x32xf32, #tpu.memory_space<vmem>>, %arg5: memref<32x32xf32, #tpu.memory_space<vmem>>, %arg6: memref<1x32xf32, #tpu.memory_space<vmem>>, %arg7: memref<32x32xf32, #tpu.memory_space<vmem>>, %arg8: memref<1x32xf32, #tpu.memory_space<vmem>>, %arg9: memref<1xf32, #tpu.memory_space<smem>>, %arg10: memref<1x64x32xf32, #tpu.memory_space<vmem>>, %arg11: memref<64x32xf32, #tpu.memory_space<vmem>>, %arg12: memref<64x1xf32, #tpu.memory_space<vmem>>, %arg13: memref<64x1xf32, #tpu.memory_space<vmem>>, %arg14: memref<64x32xf32, #tpu.memory_space<vmem>>) attributes {dimension_semantics = [#tpu.dimension_semantics<parallel>, #tpu.dimension_semantics<parallel>, #tpu.dimension_semantics<arbitrary>], iteration_bounds = array<i64: 2, 1, 1>, scalar_prefetch = 0 : i64, scratch_operands = 4 : i64, tpu.core_type = #tpu.core_type<tc>, window_params = [{transform_indices = @transform_0, window_bounds = array<i64: 1, 64, 32>}, {transform_indices = @transform_1, window_bounds = array<i64: 1, 64, 32>}, {pipeline_mode = #tpu.pipeline_mode<synchronous>, transform_indices = @transform_2, window_bounds = array<i64: 32, 32>}, {pipeline_mode = #tpu.pipeline_mode<synchronous>, transform_indices = @transform_3, window_bounds = array<i64: 1, 32>}, {pipeline_mode = #tpu.pipeline_mode<synchronous>, transform_indices = @transform_4, window_bounds = array<i64: 32, 32>}, {pipeline_mode = #tpu.pipeline_mode<synchronous>, transform_indices = @transform_5, window_bounds = array<i64: 1, 32>}, {transform_indices = @transform_6, window_bounds = array<i64: 1>}, {transform_indices = @transform_7, window_bounds = array<i64: 1, 64, 32>}]} {
    %c0_i32 = arith.constant 0 : i32
    %0 = arith.cmpi eq, %arg2, %c0_i32 : i32
    %1 = arith.extui %0 : i1 to i32
    %c0_i32_0 = arith.constant 0 : i32
    %2 = arith.cmpi ne, %1, %c0_i32_0 : i32
    scf.if %2 {
      %c0_30 = arith.constant 0 : index
      %c0_31 = arith.constant 0 : index
      %c0_32 = arith.constant 0 : index
      %41 = vector.load %arg3[%c0_30, %c0_31, %c0_32] : memref<1x64x32xf32, #tpu.memory_space<vmem>>, vector<1x64x32xf32>
      %42 = vector.shape_cast %41 : vector<1x64x32xf32> to vector<64x32xf32>
      %c0_33 = arith.constant 0 : index
      %c0_34 = arith.constant 0 : index
      %43 = vector.load %arg5[%c0_33, %c0_34] : memref<32x32xf32, #tpu.memory_space<vmem>>, vector<32x32xf32>
      %cst_35 = arith.constant dense<0.000000e+00> : vector<64x32xf32>
      %44 = tpu.matmul %42, %43, %cst_35 {dimension_numbers = #tpu.dot_dimension_numbers<[1], [0], [0], [1], [0, 0, 1, 1], [], []>} : vector<64x32xf32>, vector<32x32xf32>, vector<64x32xf32> -> vector<64x32xf32>
      %c0_36 = arith.constant 0 : index
      %c0_37 = arith.constant 0 : index
      %45 = vector.load %arg11[%c0_36, %c0_37] : memref<64x32xf32, #tpu.memory_space<vmem>>, vector<64x32xf32>
      tpu.vector_store %arg11[%c0_36, %c0_37], %44 {strides = array<i32>} : memref<64x32xf32, #tpu.memory_space<vmem>>, vector<64x32xf32>,
      %cst_38 = arith.constant 0xFF800000 : f32
      %46 = vector.broadcast %cst_38 : f32 to vector<64x1xf32>
      %c0_39 = arith.constant 0 : index
      %c0_40 = arith.constant 0 : index
      %47 = vector.load %arg12[%c0_39, %c0_40] : memref<64x1xf32, #tpu.memory_space<vmem>>, vector<64x1xf32>
      tpu.vector_store %arg12[%c0_39, %c0_40], %46 {strides = array<i32>} : memref<64x1xf32, #tpu.memory_space<vmem>>, vector<64x1xf32>,
      %cst_41 = arith.constant 0.000000e+00 : f32
      %48 = vector.broadcast %cst_41 : f32 to vector<64x1xf32>
      %c0_42 = arith.constant 0 : index
      %c0_43 = arith.constant 0 : index
      %49 = vector.load %arg13[%c0_42, %c0_43] : memref<64x1xf32, #tpu.memory_space<vmem>>, vector<64x1xf32>
      tpu.vector_store %arg13[%c0_42, %c0_43], %48 {strides = array<i32>} : memref<64x1xf32, #tpu.memory_space<vmem>>, vector<64x1xf32>,
      %cst_44 = arith.constant 0.000000e+00 : f32
      %50 = vector.broadcast %cst_44 : f32 to vector<64x32xf32>
      %c0_45 = arith.constant 0 : index
      %c0_46 = arith.constant 0 : index
      %51 = vector.load %arg14[%c0_45, %c0_46] : memref<64x32xf32, #tpu.memory_space<vmem>>, vector<64x32xf32>
      tpu.vector_store %arg14[%c0_45, %c0_46], %50 {strides = array<i32>} : memref<64x32xf32, #tpu.memory_space<vmem>>, vector<64x32xf32>,
    } else {
    }
    %c0 = arith.constant 0 : index
    %c0_1 = arith.constant 0 : index
    %c0_2 = arith.constant 0 : index
    %3 = vector.load %arg4[%c0, %c0_1, %c0_2] : memref<1x64x32xf32, #tpu.memory_space<vmem>>, vector<1x64x32xf32>
    %4 = vector.shape_cast %3 : vector<1x64x32xf32> to vector<64x32xf32>
    %c0_3 = arith.constant 0 : index
    %c0_4 = arith.constant 0 : index
    %5 = vector.load %arg11[%c0_3, %c0_4] : memref<64x32xf32, #tpu.memory_space<vmem>>, vector<64x32xf32>
    %cst = arith.constant dense<0.000000e+00> : vector<64x64xf32>
    %6 = tpu.matmul %5, %4, %cst {dimension_numbers = #tpu.dot_dimension_numbers<[1], [1], [0], [0], [0, 0, 1, 0], [], []>} : vector<64x32xf32>, vector<64x32xf32>, vector<64x64xf32> -> vector<64x64xf32>
    %c0_5 = arith.constant 0 : index
    %c0_6 = arith.constant 0 : index
    %7 = vector.load %arg6[%c0_5, %c0_6] : memref<1x32xf32, #tpu.memory_space<vmem>>, vector<1x32xf32>
    %cst_7 = arith.constant dense<0.000000e+00> : vector<1x64xf32>
    %8 = tpu.matmul %7, %4, %cst_7 {dimension_numbers = #tpu.dot_dimension_numbers<[1], [1], [0], [0], [0, 0, 1, 0], [], []>} : vector<1x32xf32>, vector<64x32xf32>, vector<1x64xf32> -> vector<1x64xf32>
    %9 = vector.broadcast %8 : vector<1x64xf32> to vector<64x64xf32>
    %10 = arith.addf %6, %9 : vector<64x64xf32>
    %c0_8 = arith.constant 0 : index
    %c0_9 = arith.constant 0 : index
    %11 = vector.load %arg12[%c0_8, %c0_9] : memref<64x1xf32, #tpu.memory_space<vmem>>, vector<64x1xf32>
    %cst_10 = arith.constant dense<0xFF800000> : vector<64xf32>
    %12 = vector.multi_reduction <maximumf>, %10, %cst_10 [1] : vector<64x64xf32> to vector<64xf32>
    %13 = vector.shape_cast %12 : vector<64xf32> to vector<64x1xf32>
    %14 = arith.maximumf %11, %13 : vector<64x1xf32>
    %15 = arith.subf %11, %14 : vector<64x1xf32>
    %16 = math.exp %15 : vector<64x1xf32>
    %17 = vector.broadcast %14 : vector<64x1xf32> to vector<64x64xf32>
    %18 = arith.subf %10, %17 : vector<64x64xf32>
    %19 = math.exp %18 : vector<64x64xf32>
    %c0_11 = arith.constant 0 : index
    %c0_12 = arith.constant 0 : index
    %20 = vector.load %arg7[%c0_11, %c0_12] : memref<32x32xf32, #tpu.memory_space<vmem>>, vector<32x32xf32>
    %cst_13 = arith.constant dense<0.000000e+00> : vector<64x32xf32>
    %21 = tpu.matmul %4, %20, %cst_13 {dimension_numbers = #tpu.dot_dimension_numbers<[1], [0], [0], [1], [0, 0, 1, 1], [], []>} : vector<64x32xf32>, vector<32x32xf32>, vector<64x32xf32> -> vector<64x32xf32>
    %c0_14 = arith.constant 0 : index
    %c0_15 = arith.constant 0 : index
    %22 = vector.load %arg8[%c0_14, %c0_15] : memref<1x32xf32, #tpu.memory_space<vmem>>, vector<1x32xf32>
    %23 = vector.broadcast %22 : vector<1x32xf32> to vector<64x32xf32>
    %24 = arith.addf %21, %23 : vector<64x32xf32>
    %c0_16 = arith.constant 0 : index
    %c0_17 = arith.constant 0 : index
    %25 = vector.load %arg13[%c0_16, %c0_17] : memref<64x1xf32, #tpu.memory_space<vmem>>, vector<64x1xf32>
    %26 = arith.mulf %16, %25 : vector<64x1xf32>
    %cst_18 = arith.constant dense<0.000000e+00> : vector<64xf32>
    %27 = vector.multi_reduction <add>, %19, %cst_18 [1] : vector<64x64xf32> to vector<64xf32>
    %28 = vector.shape_cast %27 : vector<64xf32> to vector<64x1xf32>
    %29 = arith.addf %26, %28 : vector<64x1xf32>
    %c0_19 = arith.constant 0 : index
    %c0_20 = arith.constant 0 : index
    %30 = vector.load %arg13[%c0_19, %c0_20] : memref<64x1xf32, #tpu.memory_space<vmem>>, vector<64x1xf32>
    tpu.vector_store %arg13[%c0_19, %c0_20], %29 {strides = array<i32>} : memref<64x1xf32, #tpu.memory_space<vmem>>, vector<64x1xf32>,
    %c0_21 = arith.constant 0 : index
    %c0_22 = arith.constant 0 : index
    %31 = vector.load %arg14[%c0_21, %c0_22] : memref<64x32xf32, #tpu.memory_space<vmem>>, vector<64x32xf32>
    %32 = vector.broadcast %16 : vector<64x1xf32> to vector<64x32xf32>
    %33 = arith.mulf %32, %31 : vector<64x32xf32>
    %cst_23 = arith.constant dense<0.000000e+00> : vector<64x32xf32>
    %34 = tpu.matmul %19, %24, %cst_23 {dimension_numbers = #tpu.dot_dimension_numbers<[1], [0], [0], [1], [0, 0, 1, 1], [], []>} : vector<64x64xf32>, vector<64x32xf32>, vector<64x32xf32> -> vector<64x32xf32>
    %35 = arith.addf %33, %34 : vector<64x32xf32>
    %c0_24 = arith.constant 0 : index
    %c0_25 = arith.constant 0 : index
    %36 = vector.load %arg14[%c0_24, %c0_25] : memref<64x32xf32, #tpu.memory_space<vmem>>, vector<64x32xf32>
    tpu.vector_store %arg14[%c0_24, %c0_25], %35 {strides = array<i32>} : memref<64x32xf32, #tpu.memory_space<vmem>>, vector<64x32xf32>,
    %c0_26 = arith.constant 0 : index
    %c0_27 = arith.constant 0 : index
    %37 = vector.load %arg12[%c0_26, %c0_27] : memref<64x1xf32, #tpu.memory_space<vmem>>, vector<64x1xf32>
    tpu.vector_store %arg12[%c0_26, %c0_27], %14 {strides = array<i32>} : memref<64x1xf32, #tpu.memory_space<vmem>>, vector<64x1xf32>,
    %c0_i32_28 = arith.constant 0 : i32
    %38 = arith.cmpi eq, %arg2, %c0_i32_28 : i32
    %39 = arith.extui %38 : i1 to i32
    %c0_i32_29 = arith.constant 0 : i32
    %40 = arith.cmpi ne, %39, %c0_i32_29 : i32
    scf.if %40 {
      %c0_30 = arith.constant 0 : index
      %41 = memref.load %arg9[%c0_30] : memref<1xf32, #tpu.memory_space<smem>>
      %c0_31 = arith.constant 0 : index
      %c0_32 = arith.constant 0 : index
      %42 = vector.load %arg13[%c0_31, %c0_32] : memref<64x1xf32, #tpu.memory_space<vmem>>, vector<64x1xf32>
      %43 = tpu.reciprocal %42 : vector<64x1xf32> -> vector<64x1xf32>
      %c0_33 = arith.constant 0 : index
      %c0_34 = arith.constant 0 : index
      %44 = vector.load %arg14[%c0_33, %c0_34] : memref<64x32xf32, #tpu.memory_space<vmem>>, vector<64x32xf32>
      %45 = vector.broadcast %43 : vector<64x1xf32> to vector<64x32xf32>
      %46 = arith.mulf %44, %45 : vector<64x32xf32>
      %47 = vector.broadcast %41 : f32 to vector<64x32xf32>
      %48 = arith.mulf %47, %46 : vector<64x32xf32>
      %c0_35 = arith.constant 0 : index
      %c0_36 = arith.constant 0 : index
      %c0_37 = arith.constant 0 : index
      %49 = vector.load %arg3[%c0_35, %c0_36, %c0_37] : memref<1x64x32xf32, #tpu.memory_space<vmem>>, vector<1x64x32xf32>
      %50 = vector.shape_cast %49 : vector<1x64x32xf32> to vector<64x32xf32>
      %51 = arith.addf %48, %50 : vector<64x32xf32>
      %c0_38 = arith.constant 0 : index
      %c0_39 = arith.constant 0 : index
      %c0_40 = arith.constant 0 : index
      %52 = vector.load %arg10[%c0_38, %c0_39, %c0_40] : memref<1x64x32xf32, #tpu.memory_space<vmem>>, vector<1x64x32xf32>
      %53 = vector.shape_cast %52 : vector<1x64x32xf32> to vector<64x32xf32>
      %54 = vector.shape_cast %51 : vector<64x32xf32> to vector<1x64x32xf32>
      tpu.vector_store %arg10[%c0_38, %c0_39, %c0_40], %54 {strides = array<i32>} : memref<1x64x32xf32, #tpu.memory_space<vmem>>, vector<1x64x32xf32>,
    } else {
    }
    return
  }
  func.func @transform_0(%arg0: i32, %arg1: i32, %arg2: i32) -> (i32, i32, i32) {
    %c0_i32 = arith.constant 0 : i32
    %c0_i32_0 = arith.constant 0 : i32
    return %arg0, %arg1, %c0_i32 : i32, i32, i32
  }
  func.func @transform_1(%arg0: i32, %arg1: i32, %arg2: i32) -> (i32, i32, i32) {
    %c0_i32 = arith.constant 0 : i32
    %c0_i32_0 = arith.constant 0 : i32
    return %arg0, %arg2, %c0_i32 : i32, i32, i32
  }
  func.func @transform_2(%arg0: i32, %arg1: i32, %arg2: i32) -> (i32, i32) {
    %c0_i32 = arith.constant 0 : i32
    %c0_i32_0 = arith.constant 0 : i32
    %c0_i32_1 = arith.constant 0 : i32
    return %c0_i32, %c0_i32_0 : i32, i32
  }
  func.func @transform_3(%arg0: i32, %arg1: i32, %arg2: i32) -> (i32, i32) {
    %c0_i32 = arith.constant 0 : i32
    %c0_i32_0 = arith.constant 0 : i32
    %c0_i32_1 = arith.constant 0 : i32
    return %c0_i32, %c0_i32_0 : i32, i32
  }
  func.func @transform_4(%arg0: i32, %arg1: i32, %arg2: i32) -> (i32, i32) {
    %c0_i32 = arith.constant 0 : i32
    %c0_i32_0 = arith.constant 0 : i32
    %c0_i32_1 = arith.constant 0 : i32
    return %c0_i32, %c0_i32_0 : i32, i32
  }
  func.func @transform_5(%arg0: i32, %arg1: i32, %arg2: i32) -> (i32, i32) {
    %c0_i32 = arith.constant 0 : i32
    %c0_i32_0 = arith.constant 0 : i32
    %c0_i32_1 = arith.constant 0 : i32
    return %c0_i32, %c0_i32_0 : i32, i32
  }
  func.func @transform_6(%arg0: i32, %arg1: i32, %arg2: i32) -> i32 {
    %c0_i32 = arith.constant 0 : i32
    %c0_i32_0 = arith.constant 0 : i32
    return %c0_i32 : i32
  }
  func.func @transform_7(%arg0: i32, %arg1: i32, %arg2: i32) -> (i32, i32, i32) {
    %c0_i32 = arith.constant 0 : i32
    %c0_i32_0 = arith.constant 0 : i32
    return %arg0, %arg1, %c0_i32 : i32, i32, i32
  }
}

</mosaic_0001>

<bundles_post_ra>
// kernel: tpu_custom_call.1
= control target key start
LH: loop header
LB: loop body
LE: loop exit
PB: predicated region body
PF: predicated region fallthrough
CT: control target
= control target key end

     0   :  { %s1986_s26 = smov 0   ;;  %s1988_s27 = smov 0   ;;  %s2445_s0 = inlined_call_operand.vmem [shape: f32[2,64,32], index: 0, kind: input, shape index: {}]   ;;  %s2446_s1 = inlined_call_operand.vmem [shape: f32[2,64,32], index: 1, kind: input, shape index: {}]   ;;  %s2447_s2 = inlined_call_operand.vmem [shape: f32[32,32], index: 2, kind: input, shape index: {}]   ;;  %s2448_s3 = inlined_call_operand.vmem [shape: f32[1,32], index: 3, kind: input, shape index: {}]   ;;  %s2449_s4 = inlined_call_operand.vmem [shape: f32[32,32], index: 4, kind: input, shape index: {}]   ;;  %s2450_s5 = inlined_call_operand.vmem [shape: f32[1,32], index: 5, kind: input, shape index: {}]   ;;  %s2451_s6 = inlined_call_operand.<no memory space> [shape: f32[1], index: 6, kind: input, shape index: {}]   ;;  %s2452_s7 = inlined_call_operand.vmem [shape: f32[2,64,32], index: 7, kind: output, shape index: {}]  }
   0x1   :  { %12 = sst [smem:[#allocation6]] %s2451_s6  ;;  %s1990_s28 = smov 0  }
   0x2 LB: > { %s37_s6 = sadd.s32 1, %s1932_s27  ;;  %p1521_p0 = scmp.ge.s32.totalorder %s1936_s28, 1  ;;  %s1936_s28 = sphi %s1990_s28, %s18_s28   ;;  %s1932_s27 = sphi %s1988_s27, %s2456_s27   ;;  %s1928_s26 = sphi %s1986_s26, %s2455_s26  }
   0x3   : > { %p39_p1 = scmp.ge.s32.totalorder %s37_s6, 2  ;;  %p283_p2 = scmp.lt.s32.totalorder %s1936_s28, 3 }
   0x5   : > { %s2458_s6 = smov (%p39_p1, %s37_s6), 0  ;;  %p284_p3 = pnand %p1521_p0, %p283_p2 }
   0x6   : > { %v374_v0 = vld [vmem:[%s2447_s2] sm:$0xff] (!%p284_p3)  ;;  %v375_v1 = vld [vmem:[%s2447_s2 + $0x8] sm:$0xff] (!%p284_p3)  ;;  %v376_v2 = vld [vmem:[%s2447_s2 + $0x10] sm:$0xff] (!%p284_p3)  ;;  %p333_p4 = scmp.lt.s32.totalorder (!%p284_p3), %s1928_s26, 1  ;;  %vm378_vm0 = vcmask (!%p284_p3), 261120   ;;  %v1938_v11 = vmov (!%p284_p3), 0.0|0.0   ;;  %v656_v55 = vlaneseq (!%p284_p3) }
   0x7   : > { %287 = sbr.rel (%p284_p3) target bundleno = 1071 (0x42f), region = 48  ;;  %v1763_v3 = vpack.c.bf16 (!%p284_p3), %v375_v1, %v374_v0  ;;  %v377_v4 = vld [vmem:[%s2447_s2 + $0x18] sm:$0xff] (!%p284_p3)  ;;  %vm2037_vm1 = vmpackc.low (!%p284_p3), %vm378_vm0, %vm378_vm0  ;;  %vm1939_vm2 = vmmov (!%p284_p3), 0   ;;  %v1940_v28 = vmov (!%p284_p3), 0.0   ;;  %v557_v29 = vld [vmem:[%s2448_s3] sm:$0x1] (!%p284_p3) }
   0x8   : > { %v1767_v5 = vpack.c.bf16 (!%p284_p3), %v377_v4, %v376_v2  ;;  %533 = vst.msk [vmem:[#allocation5] sm:$0xff] (!%p284_p3), %vm378_vm0, %v1940_v28  ;;  %534 = vst.msk [vmem:[#allocation5 + $0x8] sm:$0xff] (!%p284_p3), %vm378_vm0, %v1940_v28  ;;  %v918_v48 = vld [vmem:[%s2449_s4] sm:$0xff] (!%p284_p3)  ;;  %v919_v49 = vld [vmem:[%s2449_s4 + $0x8] sm:$0xff] (!%p284_p3)  ;;  %vm516_vm3 = vcmask (!%p284_p3), 7168   ;;  %v1941_v53 = vmov (!%p284_p3), -inf  }
   0x9   : > { %1764 = vmatprep.subr.bf16.mxu1 (!%p284_p3), %v1763_v3  ;;  %535 = vst.msk [vmem:[#allocation5 + $0x10] sm:$0xff] (!%p284_p3), %vm378_vm0, %v1940_v28  ;;  %536 = vst.msk [vmem:[#allocation5 + $0x18] sm:$0xff] (!%p284_p3), %vm378_vm0, %v1940_v28  ;;  %v920_v50 = vld [vmem:[%s2449_s4 + $0x10] sm:$0xff] (!%p284_p3)  ;;  %v1811_v51 = vpack.c.bf16 (!%p284_p3), %v919_v49, %v918_v48  ;;  %v921_v52 = vld [vmem:[%s2449_s4 + $0x18] sm:$0xff] (!%p284_p3)  ;;  %v657_v56 = vshrl.u32 (!%p284_p3), %v656_v55, 7  ;;  %vm797_vm4 = vcmask (!%p284_p3), 523264  }
   0xa   : > { %1766 = vmatpush3.bf16.msra.mxu1 (!%p284_p3), %v1763_v3  ;;  %537 = vst.msk [vmem:[#allocation5 + $0x20] sm:$0xff] (!%p284_p3), %vm378_vm0, %v1940_v28  ;;  %538 = vst.msk [vmem:[#allocation5 + $0x28] sm:$0xff] (!%p284_p3), %vm378_vm0, %v1940_v28  ;;  %v1815_v54 = vpack.c.bf16 (!%p284_p3), %v921_v52, %v920_v50  ;;  %s1303_s12 = sld [smem:[#allocation6]] (!%p284_p3) }
   0xb   : > { %1768 = vmatprep.subr.bf16.mxu1 (!%p284_p3), %v1767_v5  ;;  %539 = vst.msk [vmem:[#allocation5 + $0x30] sm:$0xff] (!%p284_p3), %vm378_vm0, %v1940_v28  ;;  %540 = vst.msk [vmem:[#allocation5 + $0x38] sm:$0xff] (!%p284_p3), %vm378_vm0, %v1940_v28  ;;  %v658_v57 = vsub.s32 (!%p284_p3), 0, %v657_v56 }
   0xc   : > { %517 = vst.msk [vmem:[#allocation3] sm:$0xff] (!%p284_p3), %vm516_vm3, %v1941_v53  ;;  %518 = vst.msk [vmem:[#allocation3 + $0x8] sm:$0xff] (!%p284_p3), %vm516_vm3, %v1941_v53 }
   0xd   : > { %519 = vst.msk [vmem:[#allocation3 + $0x10] sm:$0xff] (!%p284_p3), %vm516_vm3, %v1941_v53  ;;  %520 = vst.msk [vmem:[#allocation3 + $0x18] sm:$0xff] (!%p284_p3), %vm516_vm3, %v1941_v53 }
   0xe   : > { %s2460_s26 = smov (!%p333_p4, %s1928_s26), 1  ;;  %1770 = vmatpush3.bf16.msra.mxu1 %v1767_v5  ;;  %521 = vst.msk [vmem:[#allocation3 + $0x20] sm:$0xff] %vm516_vm3, %v1941_v53  ;;  %522 = vst.msk [vmem:[#allocation3 + $0x28] sm:$0xff] %vm516_vm3, %v1941_v53 }
   0xf   : > { %s2016_s14 = sshll.u32 %s2460_s26, 6  ;;  %1771 = vmatprep.subr.bf16.mxu1 %v1938_v11  ;;  %523 = vst.msk [vmem:[#allocation3 + $0x30] sm:$0xff] %vm516_vm3, %v1941_v53  ;;  %524 = vst.msk [vmem:[#allocation3 + $0x38] sm:$0xff] %vm516_vm3, %v1941_v53 }
  0x10   : > { %s2022_s17 = scalar_lea.vmem %s2445_s0, %s2016_s14  ;;  %s2028_s20 = scalar_lea.vmem %s2446_s1, %s2016_s14  ;;  %525 = vst.msk [vmem:[#allocation4] sm:$0xff] %vm516_vm3, %v1940_v28  ;;  %526 = vst.msk [vmem:[#allocation4 + $0x8] sm:$0xff] %vm516_vm3, %v1940_v28 }
  0x11   : > { %v2031_v6 = vld [vmem:[%s2022_s17] sm:$0xff]  ;;  %v2042_v8 = vld [vmem:[%s2022_s17 + $0x8] sm:$0xff]  ;;  %v2045_v9 = vld [vmem:[%s2022_s17 + $0x10] sm:$0xff]  ;;  %527 = vst.msk [vmem:[#allocation4 + $0x10] sm:$0xff] %vm516_vm3, %v1940_v28  ;;  %s2410_s16 = scalar_lea.vmem %s2452_s7, %s2016_s14 }
  0x12   : > { %1656 = vmatprep.mubr.msk.f32.mxu1 %vm378_vm0, %v2031_v6  ;;  %v541_v10 = vld [vmem:[%s2028_s20] sm:$0xff]  ;;  %v2049_v12 = vld [vmem:[%s2028_s20 + $0x8] sm:$0xff]  ;;  %v2052_v13 = vld [vmem:[%s2028_s20 + $0x10] sm:$0xff]  ;;  %528 = vst.msk [vmem:[#allocation4 + $0x18] sm:$0xff] %vm516_vm3, %v1940_v28 }
  0x13   : > { %v2055_v14 = vld [vmem:[%s2028_s20 + $0x18] sm:$0xff]  ;;  %v1772_v15 = vpack.c.bf16 %v2049_v12, %v541_v10  ;;  %1657 = vmatmul.mubr.msk.f32.vlgmr.msra.gmra.mrb[0].mxu1 %vm378_vm0, %v2042_v8  ;;  %v2070_v18 = vld [vmem:[%s2022_s17 + $0x20] sm:$0xff]  ;;  %v2082_v20 = vld [vmem:[%s2028_s20 + $0x28] sm:$0xff]  ;;  %529 = vst.msk [vmem:[#allocation4 + $0x20] sm:$0xff] %vm516_vm3, %v1940_v28 }
  0x14   : > { %v1776_v16 = vpack.c.bf16 %v2055_v14, %v2052_v13  ;;  %1659 = vmatprep.mubr.msk.f32.mxu1 %vm378_vm0, %v2045_v9  ;;  %v2065_v17 = vld [vmem:[%s2022_s17 + $0x18] sm:$0xff]  ;;  %v2079_v19 = vld [vmem:[%s2028_s20 + $0x20] sm:$0xff]  ;;  %v2087_v21 = vld [vmem:[%s2022_s17 + $0x28] sm:$0xff]  ;;  %530 = vst.msk [vmem:[#allocation4 + $0x28] sm:$0xff] %vm516_vm3, %v1940_v28 }
  0x15   : > { %1789 = vmatprep.subr.msk.bf16.mxu0 %vm2037_vm1, %v1772_v15  ;;  %v2090_v22 = vld [vmem:[%s2022_s17 + $0x30] sm:$0xff]  ;;  %v1780_v23 = vpack.c.bf16 %v2082_v20, %v2079_v19  ;;  %v2101_v24 = vld [vmem:[%s2022_s17 + $0x38] sm:$0xff]  ;;  %531 = vst.msk [vmem:[#allocation4 + $0x30] sm:$0xff] %vm516_vm3, %v1940_v28  ;;  %532 = vst.msk [vmem:[#allocation4 + $0x38] sm:$0xff] %vm516_vm3, %v1940_v28 }
  0x16   : > { %1792 = vmatpush3.bf16.xpose.msk.msra.mxu0 %vm2037_vm1, %v1772_v15  ;;  %v2116_v25 = vld [vmem:[%s2028_s20 + $0x30] sm:$0xff]  ;;  %v2119_v26 = vld [vmem:[%s2028_s20 + $0x38] sm:$0xff] }
  0x17   : > { %1795 = vmatprep.subr.msk.bf16.mxu0 %vm2037_vm1, %v1776_v16  ;;  %1660 = vmatmul.mubr.msk.f32.gmra.mrb[2].mxu1 %vm378_vm0, %v2065_v17  ;;  %v1784_v27 = vpack.c.bf16 %v2119_v26, %v2116_v25 }
  0x18   : > { %1662 = vmatprep.mubr.msk.f32.mxu1 %vm378_vm0, %v2070_v18  ;;  %1774 = vmatpush3.bf16.xpose.msk.msra.mxu1 %vm2037_vm1, %v1772_v15 }
  0x19   : > { %1775 = vmatprep.subr.bf16.mxu1 %v1938_v11 }
  0x1b   : > { %1663 = vmatmul.mubr.msk.f32.gmra.mrb[4].mxu1 %vm378_vm0, %v2087_v21 }
  0x1c   : > { %1665 = vmatprep.mubr.msk.f32.mxu1 %vm378_vm0, %v2090_v22 }
  0x1e   : > { %1798 = vmatpush3.bf16.xpose.msk.msra.mxu0 %vm2037_vm1, %v1776_v16 }
  0x1f   : > { %1801 = vmatprep.subr.msk.bf16.mxu0 %vm2037_vm1, %v1780_v23  ;;  %1666 = vmatmul.mubr.msk.f32.gmra.mrb[6].mxu1 %vm378_vm0, %v2101_v24 }
  0x20   : > { %1778 = vmatpush3.bf16.xpose.msk.msra.mxu1 %vm2037_vm1, %v1776_v16  ;;  %1684 = vmatprep.mubr.msk.f32.mxu1 %vm1939_vm2, %v1940_v28  ;;  %v2252_v28 = vld [vmem:[%s2450_s5] ss:$0 sm:$0xff] }
  0x21   : > { %1779 = vmatprep.subr.bf16.mxu1 %v1938_v11 }
  0x26   : > { %1804 = vmatpush3.bf16.xpose.msk.msra.mxu0 %vm2037_vm1, %v1780_v23 }
  0x27   : > { %1807 = vmatprep.subr.msk.bf16.mxu0 %vm2037_vm1, %v1784_v27 }
  0x28   : > { %1782 = vmatpush3.bf16.xpose.msk.msra.mxu1 %vm2037_vm1, %v1780_v23 }
  0x29   : > { %1783 = vmatprep.subr.bf16.mxu1 %v1938_v11 }
  0x2e   : > { %1810 = vmatpush3.bf16.xpose.msk.msra.mxu0 %vm2037_vm1, %v1784_v27 }
  0x30   : > { %1786 = vmatpush3.bf16.xpose.msk.msra.mxu1 %vm2037_vm1, %v1784_v27  ;;  %v1942_v27 = vmov 0  }
  0x31   : > { %1812 = vmatprep.subr.bf16.mxu1 %v1811_v51  ;;  %1864 = vset.pattern.permute.xlu0 %v1942_v27 }
  0x32   : > { %1865 = vset.pattern.permute.xlu1 %v1942_v27 }
  0x37   : > { %1685 = vmatmul.mubr.msk.f32.vlgmr.msra.gmra.mrb[8].mxu1 %vm378_vm0, %v557_v29 }
  0x38   : > { %1723 = vmatprep.mubr.msk.f32.mxu1 %vm378_vm0, %v541_v10  ;;  %1814 = vmatpush3.bf16.msra.mxu1 %v1811_v51 }
  0x39   : > { %1816 = vmatprep.subr.bf16.mxu1 %v1815_v54 }
  0x3c   : > { %1818 = vmatpush3.bf16.msra.mxu1 %v1815_v54 }
  0x3f   : > { %1724 = vmatmul.mubr.msk.f32.vlgmr.msra.gmra.mrb[10].mxu1 %vm378_vm0, %v2049_v12 }
  0x40   : > { %1726 = vmatprep.mubr.msk.f32.mxu1 %vm378_vm0, %v2052_v13 }
  0x43   : > { %1727 = vmatmul.mubr.msk.f32.gmra.mrb[12].mxu1 %vm378_vm0, %v2055_v14 }
  0x44   : > { %1729 = vmatprep.mubr.msk.f32.mxu1 %vm378_vm0, %v2079_v19 }
  0x47   : > { %1730 = vmatmul.mubr.msk.f32.gmra.mrb[14].mxu1 %vm378_vm0, %v2082_v20 }
  0x48   : > { %1732 = vmatprep.mubr.msk.f32.mxu1 %vm378_vm0, %v2116_v25 }
  0x4b   : > { %1733 = vmatmul.mubr.msk.f32.gmra.mrb[16].mxu1 %vm378_vm0, %v2119_v26 }
  0xe6   : > { %v1658_v30 = vpop.f32.mrb[0].mxu1 }
  0xe7   : > { %509 = vst.msk [vmem:[#allocation2 + $0x8] sm:$0xff] %vm378_vm0, %v1658_v30  ;;  %v469_v31 = vpop.f32.mrb[1].mxu1 }
  0xe8   : > { %508 = vst.msk [vmem:[#allocation2] sm:$0xff] %vm378_vm0, %v469_v31 }
  0xea   : > { %v1661_v32 = vpop.f32.mrb[2].mxu1 }
  0xeb   : > { %511 = vst.msk [vmem:[#allocation2 + $0x18] sm:$0xff] %vm378_vm0, %v1661_v32  ;;  %v479_v33 = vpop.f32.mrb[3].mxu1 }
  0xec   : > { %510 = vst.msk [vmem:[#allocation2 + $0x10] sm:$0xff] %vm378_vm0, %v479_v33 }
  0xee   : > { %v1664_v34 = vpop.f32.mrb[4].mxu1  ;;  %v550_v37 = vld [vmem:[#allocation2 + $0x8] sm:$0xff] }
  0xef   : > { %513 = vst.msk [vmem:[#allocation2 + $0x28] sm:$0xff] %vm378_vm0, %v1664_v34  ;;  %v489_v35 = vpop.f32.mrb[5].mxu1  ;;  %v549_v36 = vld [vmem:[#allocation2] sm:$0xff] }
  0xf0   : > { %512 = vst.msk [vmem:[#allocation2 + $0x20] sm:$0xff] %vm378_vm0, %v489_v35  ;;  %1703 = vmatprep.mubr.msk.f32.mxu0 %vm378_vm0, %v549_v36  ;;  %v2256_v34 = vld [vmem:[#allocation3] sm:$0xff] }
  0xf1   : > { %1704 = vmatmul.mubr.msk.f32.vlgmr.msra.gmra.mrb[0].mxu0 %vm378_vm0, %v550_v37  ;;  %v2261_v37 = vld [vmem:[#allocation3 + $0x10] sm:$0xff] }
  0xf2   : > { %v1667_v38 = vpop.f32.mrb[6].mxu1  ;;  %v552_v41 = vld [vmem:[#allocation2 + $0x18] sm:$0xff] }
  0xf3   : > { %515 = vst.msk [vmem:[#allocation2 + $0x38] sm:$0xff] %vm378_vm0, %v1667_v38  ;;  %v499_v39 = vpop.f32.mrb[7].mxu1  ;;  %v551_v40 = vld [vmem:[#allocation2 + $0x10] sm:$0xff]  ;;  %v2263_v38 = vld [vmem:[#allocation3 + $0x8] sm:$0xff] }
  0xf4   : > { %514 = vst.msk [vmem:[#allocation2 + $0x30] sm:$0xff] %vm378_vm0, %v499_v39  ;;  %1706 = vmatprep.mubr.msk.f32.mxu0 %vm378_vm0, %v551_v40 }
  0xf5   : > { %1707 = vmatmul.mubr.msk.f32.gmra.mrb[2].mxu0 %vm378_vm0, %v552_v41 }
  0xf6   : > { %v554_v42 = vld [vmem:[#allocation2 + $0x28] sm:$0xff] }
  0xf7   : > { %v553_v43 = vld [vmem:[#allocation2 + $0x20] sm:$0xff] }
  0xf8   : > { %1709 = vmatprep.mubr.msk.f32.mxu0 %vm378_vm0, %v553_v43 }
  0xf9   : > { %1710 = vmatmul.mubr.msk.f32.gmra.mrb[4].mxu0 %vm378_vm0, %v554_v42 }
  0xfa   : > { %v556_v44 = vld [vmem:[#allocation2 + $0x38] sm:$0xff] }
  0xfb   : > { %v555_v45 = vld [vmem:[#allocation2 + $0x30] sm:$0xff] }
  0xfc   : > { %1712 = vmatprep.mubr.msk.f32.mxu0 %vm378_vm0, %v555_v45  ;;  %v2276_v45 = vld [vmem:[#allocation3 + $0x18] sm:$0xff] }
  0xfd   : > { %1713 = vmatmul.mubr.msk.f32.gmra.mrb[6].mxu0 %vm378_vm0, %v556_v44 }
 0x10a   : > { %v652_v46 = vpop.f32.mrb[8].mxu1 }
 0x10b   : > { %v1686_v47 = vpop.f32.mrb[9].mxu1  ;;  %v659_v58 = vrot.slane %v652_v46, %v658_v57  ;;  %v2278_v46 = vld [vmem:[#allocation3 + $0x20] sm:$0xff]  ;;  %v2297_v57 = vld [vmem:[#allocation3 + $0x28] sm:$0xff] }
 0x112   : > { %v1725_v29 = vpop.f32.mrb[10].mxu1 }
 0x113   : > { %v1001_v30 = vadd.f32 %v1725_v29, %v2252_v28  ;;  %v995_v31 = vpop.f32.mrb[11].mxu1 }
 0x114   : > { %v996_v32 = vadd.f32 %v2252_v28, %v995_v31 }
 0x116   : > { %v1819_v33 = vpack.c.bf16 %v1001_v30, %v996_v32  ;;  %v1728_v44 = vpop.f32.mrb[12].mxu1 }
 0x117   : > { %v1005_v47 = vpop.f32.mrb[13].mxu1  ;;  %v1011_v50 = vadd.f32 %v1728_v44, %v2252_v28 }
 0x118   : > { %1820 = vmatprep.subr.bf16.mxu0 %v1819_v33  ;;  %v1006_v53 = vadd.f32 %v2252_v28, %v1005_v47 }
 0x119   : > { %1822 = vmatpush3.bf16.msra.mxu0 %v1819_v33 }
 0x11a   : > { %v1731_v56 = vpop.f32.mrb[14].mxu1 }
 0x1c4   : > { %v1705_v59 = vpop.f32.mrb[0].mxu0 }
 0x1c5   : > { %v2217_v60 = vadd.f32 %v1705_v59, %v659_v58  ;;  %v750_v61 = vpop.f32.mrb[1].mxu0  ;;  %v1823_v59 = vpack.c.bf16 %v1011_v50, %v1006_v53 }
 0x1c6   : > { %v2219_v62 = vadd.f32 %v750_v61, %v659_v58  ;;  %v1015_v61 = vpop.f32.mrb[15].mxu1 }
 0x1c7   : > { %v801_v7 = vsel %vm797_vm4, %v2217_v60, -inf  ;;  %1824 = vmatprep.subr.bf16.mxu0 %v1823_v59 }
 0x1c8   : > { %v1708_v63 = vpop.f32.mrb[2].mxu0  ;;  %v798_v0 = vsel %vm797_vm4, %v2219_v62, -inf  ;;  %1826 = vmatpush3.bf16.msra.mxu0 %v1823_v59 }
 0x1c9   : > { %v2223_v1 = vadd.f32 %v1708_v63, %v659_v58  ;;  %v760_v2 = vpop.f32.mrb[3].mxu0  ;;  %799 = vmax.xlane.f32.xlu0 %v798_v0 }
 0x1ca   : > { %v2225_v3 = vadd.f32 %v760_v2, %v659_v58  ;;  %v1021_v2 = vadd.f32 %v1731_v56, %v2252_v28 }
 0x1cb   : > { %v807_v14 = vsel %vm797_vm4, %v2223_v1, -inf }
 0x1cc   : > { %v1711_v4 = vpop.f32.mrb[4].mxu0  ;;  %v804_v5 = vsel %vm797_vm4, %v2225_v3, -inf }
 0x1cd   : > { %v2231_v10 = vadd.f32 %v1711_v4, %v659_v58  ;;  %v770_v11 = vpop.f32.mrb[5].mxu0  ;;  %805 = vmax.xlane.f32.xlu1 %v804_v5  ;;  %802 = vmax.xlane.f32.xlu0 %v801_v7  ;;  %v1016_v7 = vadd.f32 %v2252_v28, %v1015_v61 }
 0x1ce   : > { %v2233_v12 = vadd.f32 %v770_v11, %v659_v58 }
 0x1cf   : > { %v813_v23 = vsel %vm797_vm4, %v2231_v10, -inf }
 0x1d0   : > { %v1714_v13 = vpop.f32.mrb[6].mxu0  ;;  %v810_v15 = vsel %vm797_vm4, %v2233_v12, -inf }
 0x1d1   : > { %v2239_v16 = vadd.f32 %v1714_v13, %v659_v58  ;;  %808 = vmax.xlane.f32.xlu1 %v807_v14  ;;  %811 = vmax.xlane.f32.xlu0 %v810_v15  ;;  %v780_v19 = vpop.f32.mrb[7].mxu0  ;;  %v1734_v14 = vpop.f32.mrb[16].mxu1  ;;  %v2318_v15 = vld [vmem:[#allocation3 + $0x38] sm:$0xff] }
 0x1d2   : > { %v2241_v20 = vadd.f32 %v780_v19, %v659_v58  ;;  %v2299_v58 = vld [vmem:[#allocation3 + $0x30] sm:$0xff]  ;;  %v1827_v19 = vpack.c.bf16 %v1021_v2, %v1016_v7  ;;  %v1031_v27 = vadd.f32 %v1734_v14, %v2252_v28 }
 0x1d3   : > { %v819_v26 = vsel %vm797_vm4, %v2239_v16, -inf }
 0x1d4   : > { %v816_v25 = vsel %vm797_vm4, %v2241_v20, -inf  ;;  %1828 = vmatprep.subr.bf16.mxu0 %v1827_v19 }
 0x1d5   : > { %814 = vmax.xlane.f32.xlu1 %v813_v23  ;;  %817 = vmax.xlane.f32.xlu0 %v816_v25  ;;  %v1025_v23 = vpop.f32.mrb[17].mxu1 }
 0x1d6   : > { %v1026_v30 = vadd.f32 %v2252_v28, %v1025_v23  ;;  %1830 = vmatpush3.bf16.msra.mxu0 %v1827_v19 }
 0x1d8   : > { %v1831_v32 = vpack.c.bf16 %v1031_v27, %v1026_v30 }
 0x1d9   : > { %820 = vmax.xlane.f32.xlu1 %v819_v26 }
 0x1da   : > { %1832 = vmatprep.subr.bf16.mxu0 %v1831_v32 }
 0x1db   : > { %1834 = vmatpush3.bf16.msra.mxu0 %v1831_v32 }
 0x256   : > { %v800_v35 = vpop.xlane.xlu0 %799 }
 0x257   : > { %v2259_v36 = vmax.f32 %v2256_v34, %v800_v35 }
 0x259   : > { %v830_v39 = vsub.f32 %v2256_v34, %v2259_v36  ;;  %1292 = vst.msk [vmem:[#allocation3] sm:$0xff] %vm516_vm3, %v2259_v36  ;;  %856 = vperm.xlu0 %1864, %v2259_v36  }
 0x25a   : > { %v806_v40 = vpop.xlane.xlu1 %805  ;;  %v803_v41 = vpop.xlane.xlu0 %802 }
 0x25b   : > { %v2271_v42 = vmax.f32 %v2261_v37, %v806_v40  ;;  %v2274_v43 = vmax.f32 %v2263_v38, %v803_v41 }
 0x25d   : > { %v832_v48 = vsub.f32 %v2261_v37, %v2271_v42  ;;  %1294 = vst.msk [vmem:[#allocation3 + $0x10] sm:$0xff] %vm516_vm3, %v2271_v42  ;;  %v831_v49 = vsub.f32 %v2263_v38, %v2274_v43  ;;  %1293 = vst.msk [vmem:[#allocation3 + $0x8] sm:$0xff] %vm516_vm3, %v2274_v43  ;;  %861 = vperm.xlu1 %1865, %v2274_v43  }
 0x25e   : > { %v809_v51 = vpop.xlane.xlu1 %808  ;;  %v812_v52 = vpop.xlane.xlu0 %811 }
 0x25f   : > { %v2292_v54 = vmax.f32 %v2276_v45, %v809_v51  ;;  %v2295_v55 = vmax.f32 %v2278_v46, %v812_v52 }
 0x261   : > { %v833_v63 = vsub.f32 %v2276_v45, %v2292_v54  ;;  %1295 = vst.msk [vmem:[#allocation3 + $0x18] sm:$0xff] %vm516_vm3, %v2292_v54  ;;  %v834_v0 = vsub.f32 %v2278_v46, %v2295_v55  ;;  %1296 = vst.msk [vmem:[#allocation3 + $0x20] sm:$0xff] %vm516_vm3, %v2295_v55  ;;  %871 = vperm.xlu1 %1865, %v2292_v54  }
 0x262   : > { %v815_v4 = vpop.xlane.xlu1 %814  ;;  %v818_v5 = vpop.xlane.xlu0 %817 }
 0x263   : > { %v2313_v11 = vmax.f32 %v2297_v57, %v815_v4  ;;  %v2316_v13 = vmax.f32 %v2299_v58, %v818_v5  ;;  %v846_v38 = vmul.f32 1.442695, %v834_v0 }
 0x265   : > { %v835_v25 = vsub.f32 %v2297_v57, %v2313_v11  ;;  %1297 = vst.msk [vmem:[#allocation3 + $0x28] sm:$0xff] %vm516_vm3, %v2313_v11  ;;  %v836_v26 = vsub.f32 %v2299_v58, %v2316_v13  ;;  %1298 = vst.msk [vmem:[#allocation3 + $0x30] sm:$0xff] %vm516_vm3, %v2316_v13  ;;  %866 = vperm.xlu1 %1865, %v2271_v42  }
 0x266   : > { %v821_v29 = vpop.xlane.xlu1 %820 }
 0x267   : > { %v2332_v31 = vmax.f32 %v2318_v15, %v821_v29  ;;  %v848_v34 = vmul.f32 1.442695, %v835_v25  ;;  %v850_v36 = vmul.f32 1.442695, %v836_v26 }
 0x269   : > { %v837_v33 = vsub.f32 %v2318_v15, %v2332_v31  ;;  %1299 = vst.msk [vmem:[#allocation3 + $0x38] sm:$0xff] %vm516_vm3, %v2332_v31  ;;  %881 = vperm.xlu1 %1865, %v2313_v11   ;;  %v1037_v15 = vld [vmem:[#allocation4 + $0x18] sm:$0xff] }
 0x26b   : > { %v852_v37 = vmul.f32 1.442695, %v837_v33  ;;  %v1036_v33 = vld [vmem:[#allocation4 + $0x10] sm:$0xff] }
 0x26d   : > { %876 = vperm.xlu1 %1865, %v2295_v55   ;;  %v1034_v55 = vld [vmem:[#allocation4] sm:$0xff] }
 0x271   : > { %886 = vperm.xlu1 %1865, %v2316_v13  }
 0x275   : > { %891 = vperm.xlu1 %1865, %v2332_v31  }
 0x2d8   : > { %v857_v28 = vpop.permute.xlu0 %856 }
 0x2d9   : > { %v894_v35 = vsub.f32 %v2219_v62, %v857_v28 }
 0x2db   : > { %v902_v40 = vmul.f32 1.442695, %v894_v35 }
 0x2dc   : > { %v862_v41 = vpop.permute.xlu1 %861 }
 0x2dd   : > { %1866 = vpow2.f32 %v902_v40  ;;  %v895_v44 = vsub.f32 %v2217_v60, %v862_v41 }
 0x2df   : > { %v904_v47 = vmul.f32 1.442695, %v895_v44 }
 0x2e0   : > { %v872_v50 = vpop.permute.xlu1 %871 }
 0x2e1   : > { %1868 = vpow2.f32 %v904_v47  ;;  %v897_v51 = vsub.f32 %v2223_v1, %v872_v50 }
 0x2e3   : > { %v908_v52 = vmul.f32 1.442695, %v897_v51 }
 0x2e4   : > { %v867_v53 = vpop.permute.xlu1 %866 }
 0x2e5   : > { %1870 = vpow2.f32 %v908_v52  ;;  %v896_v56 = vsub.f32 %v2225_v3, %v867_v53  ;;  %v840_v52 = vmul.f32 1.442695, %v831_v49  ;;  %v838_v53 = vmul.f32 1.442695, %v830_v39 }
 0x2e7   : > { %v1867_v59 = vpop.eup %1866  ;;  %v906_v61 = vmul.f32 1.442695, %v896_v56  ;;  %v842_v56 = vmul.f32 1.442695, %v832_v48 }
 0x2e8   : > { %v882_v2 = vpop.permute.xlu1 %881  ;;  %1751 = vmatprep.mubr.msk.f32.mxu0 %vm797_vm4, %v1867_v59  ;;  %v1050_v62 = vsel %vm797_vm4, %v1867_v59, 0.0  ;;  %v844_v59 = vmul.f32 1.442695, %v833_v63  ;;  %v1035_v63 = vld [vmem:[#allocation4 + $0x8] sm:$0xff] }
 0x2e9   : > { %1872 = vpow2.f32 %v906_v61  ;;  %v899_v60 = vsub.f32 %v2231_v10, %v882_v2  ;;  %1051 = vadd.xlane.f32.xlu1 %v1050_v62 }
 0x2eb   : > { %v1869_v4 = vpop.eup %1868  ;;  %v912_v5 = vmul.f32 1.442695, %v899_v60 }
 0x2ec   : > { %v877_v7 = vpop.permute.xlu1 %876  ;;  %1752 = vmatmul.mubr.msk.f32.vlgmr.msra.gmra.mrb[8].mxu0 %vm797_vm4, %v1869_v4  ;;  %v1053_v1 = vsel %vm797_vm4, %v1869_v4, 0.0  ;;  %v1039_v4 = vld [vmem:[#allocation4 + $0x28] sm:$0xff] }
 0x2ed   : > { %1874 = vpow2.f32 %v912_v5  ;;  %v898_v3 = vsub.f32 %v2233_v12, %v877_v7  ;;  %1054 = vadd.xlane.f32.xlu0 %v1053_v1 }
 0x2ef   : > { %v1871_v14 = vpop.eup %1870  ;;  %v910_v19 = vmul.f32 1.442695, %v898_v3 }
 0x2f0   : > { %v887_v23 = vpop.permute.xlu1 %886  ;;  %v1059_v27 = vsel %vm797_vm4, %v1871_v14, 0.0 }
 0x2f1   : > { %1876 = vpow2.f32 %v910_v19  ;;  %v900_v10 = vsub.f32 %v2241_v20, %v887_v23  ;;  %1060 = vadd.xlane.f32.xlu1 %v1059_v27 }
 0x2f3   : > { %v1873_v29 = vpop.eup %1872  ;;  %v914_v30 = vmul.f32 1.442695, %v900_v10 }
 0x2f4   : > { %v892_v32 = vpop.permute.xlu1 %891  ;;  %1754 = vmatprep.mubr.msk.f32.mxu0 %vm797_vm4, %v1873_v29  ;;  %v1056_v28 = vsel %vm797_vm4, %v1873_v29, 0.0  ;;  %v1040_v29 = vld [vmem:[#allocation4 + $0x30] sm:$0xff] }
 0x2f5   : > { %1878 = vpow2.f32 %v914_v30  ;;  %v901_v12 = vsub.f32 %v2239_v16, %v892_v32  ;;  %1057 = vadd.xlane.f32.xlu0 %v1056_v28  ;;  %1755 = vmatmul.mubr.msk.f32.gmra.mrb[10].mxu0 %vm797_vm4, %v1871_v14  ;;  %v1038_v14 = vld [vmem:[#allocation4 + $0x20] sm:$0xff] }
 0x2f7   : > { %v1875_v35 = vpop.eup %1874  ;;  %v916_v40 = vmul.f32 1.442695, %v901_v12 }
 0x2f8   : > { %v1065_v41 = vsel %vm797_vm4, %v1875_v35, 0.0 }
 0x2f9   : > { %1880 = vpow2.f32 %v916_v40  ;;  %1066 = vadd.xlane.f32.xlu1 %v1065_v41  ;;  %v1041_v40 = vld [vmem:[#allocation4 + $0x38] sm:$0xff] }
 0x2fa   : > { %1882 = vpow2.f32 %v840_v52 }
 0x2fb   : > { %v1877_v20 = vpop.eup %1876  ;;  %1884 = vpow2.f32 %v838_v53 }
 0x2fc   : > { %1757 = vmatprep.mubr.msk.f32.mxu0 %vm797_vm4, %v1877_v20  ;;  %v1062_v44 = vsel %vm797_vm4, %v1877_v20, 0.0  ;;  %1886 = vpow2.f32 %v842_v56 }
 0x2fd   : > { %1063 = vadd.xlane.f32.xlu0 %v1062_v44  ;;  %1758 = vmatmul.mubr.msk.f32.gmra.mrb[12].mxu0 %vm797_vm4, %v1875_v35  ;;  %1888 = vpow2.f32 %v844_v59 }
 0x2fe   : > { %1890 = vpow2.f32 %v846_v38 }
 0x2ff   : > { %v1879_v47 = vpop.eup %1878  ;;  %1892 = vpow2.f32 %v848_v34 }
 0x300   : > { %1760 = vmatprep.mubr.msk.f32.mxu0 %vm797_vm4, %v1879_v47  ;;  %v1068_v16 = vsel %vm797_vm4, %v1879_v47, 0.0  ;;  %1894 = vpow2.f32 %v850_v36 }
 0x301   : > { %1069 = vadd.xlane.f32.xlu0 %v1068_v16  ;;  %1896 = vpow2.f32 %v852_v37 }
 0x303   : > { %v1881_v50 = vpop.eup %1880 }
 0x304   : > { %1761 = vmatmul.mubr.msk.f32.gmra.mrb[14].mxu0 %vm797_vm4, %v1881_v50  ;;  %v1071_v51 = vsel %vm797_vm4, %v1881_v50, 0.0  ;;  %v1883_v39 = vpop.eup %1882 }
 0x305   : > { %1072 = vadd.xlane.f32.xlu1 %v1071_v51  ;;  %v1885_v42 = vpop.eup %1884  ;;  %v1043_v11 = vmul.f32 %v1883_v39, %v1035_v63 }
 0x306   : > { %v1887_v43 = vpop.eup %1886  ;;  %v1042_v57 = vmul.f32 %v1885_v42, %v1034_v55 }
 0x307   : > { %v1889_v45 = vpop.eup %1888  ;;  %v1044_v62 = vmul.f32 %v1887_v43, %v1036_v33 }
 0x308   : > { %v1891_v46 = vpop.eup %1890  ;;  %v1045_v26 = vmul.f32 %v1889_v45, %v1037_v15 }
 0x309   : > { %v1893_v48 = vpop.eup %1892  ;;  %v1046_v27 = vmul.f32 %v1891_v46, %v1038_v14 }
 0x30a   : > { %v1895_v49 = vpop.eup %1894  ;;  %v1047_v1 = vmul.f32 %v1893_v48, %v1039_v4 }
 0x30b   : > { %v1897_v54 = vpop.eup %1896  ;;  %v1048_v12 = vmul.f32 %v1895_v49, %v1040_v29 }
 0x30c   : > { %v1049_v47 = vmul.f32 %v1897_v54, %v1041_v40  ;;  %v1376_v40 = vstv %s1303_s12 }
 0x316   : > { %1106 = vperm.xlu1 %1865, %v1883_v39   ;;  %v1092_v39 = vld [vmem:[#allocation5 + $0x8] sm:$0xff] }
 0x317   : > { %1101 = vperm.xlu0 %1864, %v1885_v42  }
 0x31a   : > { %1111 = vperm.xlu1 %1865, %v1887_v43   ;;  %v1091_v43 = vld [vmem:[#allocation5] sm:$0xff] }
 0x31b   : > { %1116 = vperm.xlu0 %1864, %v1889_v45  }
 0x31e   : > { %1121 = vperm.xlu1 %1865, %v1891_v46  }
 0x31f   : > { %1126 = vperm.xlu0 %1864, %v1893_v48  }
 0x322   : > { %1131 = vperm.xlu1 %1865, %v1895_v49  }
 0x323   : > { %1136 = vperm.xlu0 %1864, %v1897_v54  }
 0x376   : > { %v1052_v58 = vpop.xlane.xlu1 %1051 }
 0x377   : > { %v1074_v0 = vadd.f32 %v1052_v58, %v1042_v57  ;;  %v1094_v58 = vld [vmem:[#allocation5 + $0x18] sm:$0xff] }
 0x379   : > { %1083 = vst.msk [vmem:[#allocation4] sm:$0xff] %vm516_vm3, %v1074_v0  ;;  %v1093_v0 = vld [vmem:[#allocation5 + $0x10] sm:$0xff] }
 0x37a   : > { %v1055_v13 = vpop.xlane.xlu0 %1054 }
 0x37b   : > { %v1075_v25 = vadd.f32 %v1055_v13, %v1043_v11 }
 0x37d   : > { %1084 = vst.msk [vmem:[#allocation4 + $0x8] sm:$0xff] %vm516_vm3, %v1075_v25 }
 0x37e   : > { %v1061_v31 = vpop.xlane.xlu1 %1060 }
 0x37f   : > { %v1077_v61 = vadd.f32 %v1061_v31, %v1045_v26 }
 0x380   : > { %v1304_v2 = vld [vmem:[#allocation4] sm:$0xff] }
 0x381   : > { %1086 = vst.msk [vmem:[#allocation4 + $0x18] sm:$0xff] %vm516_vm3, %v1077_v61  ;;  %1898 = vrcp.f32 %v1304_v2  ;;  %v1096_v61 = vld [vmem:[#allocation5 + $0x28] sm:$0xff] }
 0x382   : > { %v1058_v60 = vpop.xlane.xlu0 %1057 }
 0x383   : > { %v1076_v5 = vadd.f32 %v1058_v60, %v1044_v62  ;;  %v1095_v62 = vld [vmem:[#allocation5 + $0x20] sm:$0xff] }
 0x384   : > { %v1305_v7 = vld [vmem:[#allocation4 + $0x8] sm:$0xff] }
 0x385   : > { %1085 = vst.msk [vmem:[#allocation4 + $0x10] sm:$0xff] %vm516_vm3, %v1076_v5  ;;  %1900 = vrcp.f32 %v1305_v7 }
 0x386   : > { %v1067_v3 = vpop.xlane.xlu1 %1066 }
 0x387   : > { %v1079_v19 = vadd.f32 %v1067_v3, %v1047_v1 }
 0x388   : > { %v1307_v23 = vld [vmem:[#allocation4 + $0x18] sm:$0xff] }
 0x389   : > { %1088 = vst.msk [vmem:[#allocation4 + $0x28] sm:$0xff] %vm516_vm3, %v1079_v19  ;;  %1902 = vrcp.f32 %v1307_v23  ;;  %v1098_v19 = vld [vmem:[#allocation5 + $0x38] sm:$0xff] }
 0x38a   : > { %v1064_v10 = vpop.xlane.xlu0 %1063 }
 0x38b   : > { %v1899_v30 = vpop.eup %1898  ;;  %v1078_v32 = vadd.f32 %v1064_v10, %v1046_v27  ;;  %v1097_v27 = vld [vmem:[#allocation5 + $0x30] sm:$0xff] }
 0x38c   : > { %1330 = vperm.xlu1 %1865, %v1899_v30   ;;  %v1306_v28 = vld [vmem:[#allocation4 + $0x10] sm:$0xff] }
 0x38d   : > { %1087 = vst.msk [vmem:[#allocation4 + $0x20] sm:$0xff] %vm516_vm3, %v1078_v32  ;;  %1904 = vrcp.f32 %v1306_v28 }
 0x38e   : > { %v1070_v35 = vpop.xlane.xlu0 %1069 }
 0x38f   : > { %v1901_v41 = vpop.eup %1900  ;;  %v1080_v20 = vadd.f32 %v1070_v35, %v1048_v12 }
 0x390   : > { %1335 = vperm.xlu0 %1864, %v1901_v41   ;;  %v1309_v44 = vld [vmem:[#allocation4 + $0x28] sm:$0xff] }
 0x391   : > { %1089 = vst.msk [vmem:[#allocation4 + $0x30] sm:$0xff] %vm516_vm3, %v1080_v20  ;;  %1906 = vrcp.f32 %v1309_v44 }
 0x392   : > { %v1073_v16 = vpop.xlane.xlu1 %1072 }
 0x393   : > { %v1903_v50 = vpop.eup %1902  ;;  %v1081_v51 = vadd.f32 %v1073_v16, %v1049_v47 }
 0x394   : > { %1345 = vperm.xlu0 %1864, %v1903_v50   ;;  %v1308_v52 = vld [vmem:[#allocation4 + $0x20] sm:$0xff] }
 0x395   : > { %1090 = vst.msk [vmem:[#allocation4 + $0x38] sm:$0xff] %vm516_vm3, %v1081_v51  ;;  %1908 = vrcp.f32 %v1308_v52 }
 0x396   : > { %v1107_v42 = vpop.permute.xlu1 %1106  ;;  %v1102_v45 = vpop.permute.xlu0 %1101 }
 0x397   : > { %v1905_v53 = vpop.eup %1904  ;;  %v1140_v46 = vmul.f32 %v1107_v42, %v1092_v39  ;;  %v1139_v48 = vmul.f32 %v1102_v45, %v1091_v43 }
 0x398   : > { %1340 = vperm.xlu1 %1865, %v1905_v53   ;;  %v1310_v56 = vld [vmem:[#allocation4 + $0x30] sm:$0xff] }
 0x399   : > { %1910 = vrcp.f32 %v1310_v56 }
 0x39a   : > { %v1117_v63 = vpop.permute.xlu0 %1116  ;;  %v1112_v11 = vpop.permute.xlu1 %1111 }
 0x39b   : > { %v1907_v59 = vpop.eup %1906  ;;  %v1142_v13 = vmul.f32 %v1117_v63, %v1094_v58  ;;  %v1141_v15 = vmul.f32 %v1112_v11, %v1093_v0 }
 0x39c   : > { %1355 = vperm.xlu0 %1864, %v1907_v59   ;;  %v1311_v38 = vld [vmem:[#allocation4 + $0x38] sm:$0xff] }
 0x39d   : > { %1912 = vrcp.f32 %v1311_v38 }
 0x39e   : > { %v1127_v2 = vpop.permute.xlu0 %1126  ;;  %v1122_v60 = vpop.permute.xlu1 %1121 }
 0x39f   : > { %v1909_v34 = vpop.eup %1908  ;;  %v1144_v4 = vmul.f32 %v1127_v2, %v1096_v61  ;;  %v1143_v5 = vmul.f32 %v1122_v60, %v1095_v62 }
 0x3a0   : > { %1350 = vperm.xlu1 %1865, %v1909_v34  }
 0x3a2   : > { %v1137_v23 = vpop.permute.xlu0 %1136  ;;  %v1132_v10 = vpop.permute.xlu1 %1131 }
 0x3a3   : > { %v1911_v36 = vpop.eup %1910  ;;  %v1146_v29 = vmul.f32 %v1137_v23, %v1098_v19  ;;  %v1145_v30 = vmul.f32 %v1132_v10, %v1097_v27 }
 0x3a4   : > { %1360 = vperm.xlu1 %1865, %v1911_v36  }
 0x3a7   : > { %v1913_v37 = vpop.eup %1912 }
 0x3a8   : > { %1365 = vperm.xlu0 %1864, %v1913_v37  }
 0x3bf   : > { %v1753_v49 = vpop.f32.mrb[8].mxu0 }
 0x3c0   : > { %v1277_v54 = vadd.f32 %v1753_v49, %v1140_v46  ;;  %v1237_v55 = vpop.f32.mrb[9].mxu0 }
 0x3c1   : > { %v1276_v57 = vadd.f32 %v1237_v55, %v1139_v48 }
 0x3c2   : > { %1285 = vst.msk [vmem:[#allocation5 + $0x8] sm:$0xff] %vm378_vm0, %v1277_v54 }
 0x3c3   : > { %1284 = vst.msk [vmem:[#allocation5] sm:$0xff] %vm378_vm0, %v1276_v57 }
 0x3c8   : > { %v1756_v25 = vpop.f32.mrb[10].mxu0 }
 0x3c9   : > { %v1279_v26 = vadd.f32 %v1756_v25, %v1142_v13  ;;  %v1247_v31 = vpop.f32.mrb[11].mxu0  ;;  %v1321_v16 = vld [vmem:[#allocation5 + $0x8] sm:$0xff] }
 0x3ca   : > { %v1278_v33 = vadd.f32 %v1247_v31, %v1141_v15  ;;  %v1320_v20 = vld [vmem:[#allocation5] sm:$0xff] }
 0x3cb   : > { %1287 = vst.msk [vmem:[#allocation5 + $0x18] sm:$0xff] %vm378_vm0, %v1279_v26 }
 0x3cc   : > { %1286 = vst.msk [vmem:[#allocation5 + $0x10] sm:$0xff] %vm378_vm0, %v1278_v33 }
 0x3d0   : > { %v1759_v7 = vpop.f32.mrb[12].mxu0 }
 0x3d1   : > { %v1281_v1 = vadd.f32 %v1759_v7, %v1144_v4  ;;  %v1257_v3 = vpop.f32.mrb[13].mxu0 }
 0x3d2   : > { %v1280_v14 = vadd.f32 %v1257_v3, %v1143_v5  ;;  %v1323_v56 = vld [vmem:[#allocation5 + $0x18] sm:$0xff] }
 0x3d3   : > { %1289 = vst.msk [vmem:[#allocation5 + $0x28] sm:$0xff] %vm378_vm0, %v1281_v1  ;;  %v1322_v37 = vld [vmem:[#allocation5 + $0x10] sm:$0xff] }
 0x3d4   : > { %1288 = vst.msk [vmem:[#allocation5 + $0x20] sm:$0xff] %vm378_vm0, %v1280_v14 }
 0x3d7   : > { %v1762_v32 = vpop.f32.mrb[14].mxu0 }
 0x3d8   : > { %v1283_v28 = vadd.f32 %v1762_v32, %v1146_v29  ;;  %v1267_v12 = vpop.f32.mrb[15].mxu0 }
 0x3d9   : > { %v1282_v35 = vadd.f32 %v1267_v12, %v1145_v30 }
 0x3da   : > { %1291 = vst.msk [vmem:[#allocation5 + $0x38] sm:$0xff] %vm378_vm0, %v1283_v28  ;;  %v1325_v45 = vld [vmem:[#allocation5 + $0x28] sm:$0xff] }
 0x3db   : > { %1290 = vst.msk [vmem:[#allocation5 + $0x30] sm:$0xff] %vm378_vm0, %v1282_v35  ;;  %v1324_v54 = vld [vmem:[#allocation5 + $0x20] sm:$0xff] }
 0x3e1   : > { %v1327_v15 = vld [vmem:[#allocation5 + $0x38] sm:$0xff] }
 0x3e2   : > { %v1326_v63 = vld [vmem:[#allocation5 + $0x30] sm:$0xff] }
 0x40b   : > { %v1331_v41 = vpop.permute.xlu1 %1330 }
 0x40c   : > { %v1368_v44 = vmul.f32 %v1331_v41, %v1320_v20 }
 0x40e   : > { %v1377_v47 = vmul.f32 %v1376_v40, %v1368_v44 }
 0x40f   : > { %v1336_v50 = vpop.permute.xlu0 %1335 }
 0x410   : > { %v1393_v51 = vadd.f32 %v1377_v47, %v2031_v6  ;;  %v1369_v52 = vmul.f32 %v1336_v50, %v1321_v16 }
 0x412   : > { %1401 = vst.msk [vmem:[%s2410_s16] sm:$0xff] %vm378_vm0, %v1393_v51  ;;  %v1378_v53 = vmul.f32 %v1376_v40, %v1369_v52 }
 0x413   : > { %v1346_v59 = vpop.permute.xlu0 %1345 }
 0x414   : > { %v1394_v38 = vadd.f32 %v1378_v53, %v2042_v8  ;;  %v1371_v34 = vmul.f32 %v1346_v59, %v1323_v56 }
 0x416   : > { %1402 = vst.msk [vmem:[%s2410_s16 + $0x8] sm:$0xff] %vm378_vm0, %v1394_v38  ;;  %v1380_v36 = vmul.f32 %v1376_v40, %v1371_v34 }
 0x417   : > { %v1341_v39 = vpop.permute.xlu1 %1340 }
 0x418   : > { %v1396_v42 = vadd.f32 %v1380_v36, %v2065_v17  ;;  %v1370_v43 = vmul.f32 %v1341_v39, %v1322_v37 }
 0x41a   : > { %1404 = vst.msk [vmem:[%s2410_s16 + $0x18] sm:$0xff] %vm378_vm0, %v1396_v42  ;;  %v1379_v6 = vmul.f32 %v1376_v40, %v1370_v43 }
 0x41b   : > { %v1356_v46 = vpop.permute.xlu0 %1355 }
 0x41c   : > { %v1395_v48 = vadd.f32 %v1379_v6, %v2045_v9  ;;  %v1373_v49 = vmul.f32 %v1356_v46, %v1325_v45 }
 0x41e   : > { %1403 = vst.msk [vmem:[%s2410_s16 + $0x10] sm:$0xff] %vm378_vm0, %v1395_v48  ;;  %v1382_v8 = vmul.f32 %v1376_v40, %v1373_v49 }
 0x41f   : > { %v1351_v55 = vpop.permute.xlu1 %1350 }
 0x420   : > { %v1398_v57 = vadd.f32 %v1382_v8, %v2087_v21  ;;  %v1372_v58 = vmul.f32 %v1351_v55, %v1324_v54 }
 0x422   : > { %1406 = vst.msk [vmem:[%s2410_s16 + $0x28] sm:$0xff] %vm378_vm0, %v1398_v57  ;;  %v1381_v17 = vmul.f32 %v1376_v40, %v1372_v58 }
 0x423   : > { %v1361_v0 = vpop.permute.xlu1 %1360 }
 0x424   : > { %v1397_v11 = vadd.f32 %v1381_v17, %v2070_v18  ;;  %v1374_v13 = vmul.f32 %v1361_v0, %v1326_v63 }
 0x426   : > { %1405 = vst.msk [vmem:[%s2410_s16 + $0x20] sm:$0xff] %vm378_vm0, %v1397_v11  ;;  %v1383_v9 = vmul.f32 %v1376_v40, %v1374_v13 }
 0x427   : > { %v1366_v25 = vpop.permute.xlu0 %1365 }
 0x428   : > { %v1399_v26 = vadd.f32 %v1383_v9, %v2090_v22  ;;  %v1375_v31 = vmul.f32 %v1366_v25, %v1327_v15 }
 0x42a   : > { %1407 = vst.msk [vmem:[%s2410_s16 + $0x30] sm:$0xff] %vm378_vm0, %v1399_v26  ;;  %v1384_v21 = vmul.f32 %v1376_v40, %v1375_v31 }
 0x42c   : > { %v1400_v33 = vadd.f32 %v1384_v21, %v2101_v24 }
 0x42e   : > { %1408 = vst.msk [vmem:[%s2410_s16 + $0x38] sm:$0xff] %vm378_vm0, %v1400_v33 }
 0x42f PF: > { %s18_s28 = sadd.s32 1, %s1936_s28   ;;  %s2455_s26 = smov %s1932_s27 }
 0x430   : > { %p15_p5 = scmp.ge.s32.totalorder %s18_s28, 4   ;;  %s2456_s27 = smov %s2458_s6 }
 0x432   :  { %17 = sbr.rel (!%p15_p5) target bundleno = 2 (0x2), region = 89 }

</bundles_post_ra>
